<compile_context>
chip_gen: v7x
topology: tpu7x:2x2x1
jax: 0.10.0
libtpu: 0.0.40
codegen_flags: <defaults>
</compile_context>

<pallas_src>
import math

import jax
import jax.numpy as jnp
from jax.experimental import pallas as pl
from jax.experimental.pallas import tpu as pltpu

_INV_SQRT2 = 1.0 / math.sqrt(2.0)


def _gelu_exact(h):
    # exact (erf) GELU — matches torch.nn.GELU() default.
    # TODO(synk): on v5e a tanh-approx GELU would ride the otherwise-idle EUP slot, but it
    # deviates from torch.nn.GELU() exact semantics, so keep erf.
    return 0.5 * h * (1.0 + jax.lax.erf(h * _INV_SQRT2))


def _image_side(v):
    hw = int(round((v - 1) ** 0.5))
    assert hw * hw == v - 1, f"token count {v - 1} is not a perfect square"
    return hw


def _vmem_cap_bytes():
    try:
        cap = int(pltpu.get_tpu_info().vmem_capacity_bytes)
        if cap > 0:
            return cap
    except Exception:
        pass
    return 64 << 20  # conservative default (v7x per-core VMEM)


def _compiler_params(sem, vmem_est):
    # Cap at ~80% of physical VMEM (leaves Mosaic scratch headroom on v7x, allows >64MiB
    # on v5e/v6e where physical VMEM is 128 MiB).
    cap = _vmem_cap_bytes()
    limit = int(min(max(vmem_est + (4 << 20), 32 << 20), int(cap * 0.8)))
    return pltpu.CompilerParams(dimension_semantics=sem, vmem_limit_bytes=limit)


def _pick_row_tile(n_rows, desired_rows):
    """Row-tile: multiple of 8 (or full extent), split so the 'parallel' token axis gets
    >= 2 grid steps when possible (keeps both v7x TensorCores busy)."""
    desired_rows = max(1, desired_rows)
    if desired_rows >= n_rows:
        half = n_rows // 2
        if n_rows >= 16 and half % 8 == 0:
            return half
        return n_rows                      # single full-extent block (always legal)
    return min(max(8, (desired_rows // 8) * 8), n_rows)


# ---------------------------------------------------------------------------
# The single kernel: a dense 2-layer MLP over one row tile.  Both paths use it; the
# pixel-shuffle permutation / token packing live entirely in the wrapper-side weight
# layout and (free) input/output reshapes.
# ---------------------------------------------------------------------------
def _mlp_kernel(x_ref, w1_ref, b1_ref, w2_ref, b2_ref, o_ref):
    h = jnp.dot(x_ref[...], w1_ref[...], preferred_element_type=jnp.float32) + b1_ref[...]
    h = _gelu_exact(h)
    o = jnp.dot(h.astype(w2_ref.dtype), w2_ref[...],
                preferred_element_type=jnp.float32) + b2_ref[...]
    o_ref[...] = o.astype(o_ref.dtype)


def _run_mlp(x2d, w1, b1, w2, b2, out_dtype, row_tile):
    rows, k = x2d.shape
    n1 = w1.shape[1]
    n2 = w2.shape[1]
    tp = _pick_row_tile(rows, row_tile)

    # TODO(synk): mark the grid-invariant weight/bias BlockSpecs single-buffered
    # (pipeline_mode=pl.Buffered(1)) once verified on the target jax build; it halves
    # their resident VMEM (matters most under v7x's 64 MiB budget).
    x_it = jnp.dtype(x2d.dtype).itemsize
    w_it = jnp.dtype(w1.dtype).itemsize
    vmem_est = (2 * tp * k * x_it                                    # x blocks (dbl-buffered)
                + 2 * tp * n2 * jnp.dtype(out_dtype).itemsize        # out blocks
                + 2 * ((k * n1 + n1 * n2) * w_it + (n1 + n2) * 4)    # weights + biases
                + tp * (n1 + n2) * 4 + tp * k * x_it)                # in-kernel temporaries

    return pl.pallas_call(
        _mlp_kernel,
        out_shape=jax.ShapeDtypeStruct((rows, n2), out_dtype),
        grid_spec=pltpu.PrefetchScalarGridSpec(
            num_scalar_prefetch=0,
            grid=(pl.cdiv(rows, tp),),
            in_specs=[
                pl.BlockSpec((tp, k), lambda i: (i, 0)),
                pl.BlockSpec((k, n1), lambda i: (0, 0)),
                pl.BlockSpec((1, n1), lambda i: (0, 0)),
                pl.BlockSpec((n1, n2), lambda i: (0, 0)),
                pl.BlockSpec((1, n2), lambda i: (0, 0)),
            ],
            out_specs=pl.BlockSpec((tp, n2), lambda i: (i, 0)),
        ),
        compiler_params=_compiler_params(("parallel",), vmem_est),
    )(x2d, w1, b1, w2, b2)


# ---------------------------------------------------------------------------
# Packed path: pixel-shuffle permutation + B-token block-diagonal packing folded into
# the MLP weights.  Packed row feature index = dw*(B*s*D) + hc*(s*D) + dh*D + d;
# packed hidden / output column index = hc*H + h  /  hc*DO + o.
# ---------------------------------------------------------------------------
def _packed_weights(params, s, D, B, compute_dtype):
    w1, b1, w2, b2 = params
    K1, H = w1.shape
    DO = w2.shape[1]
    assert K1 == s * s * D, (K1, s, D)
    eye = jnp.eye(B, dtype=jnp.float32)
    w1r = jnp.asarray(w1, jnp.float32).reshape(s, s * D, H)
    w1b = jnp.einsum("dqh,ce->dcqeh", w1r, eye).reshape(s * B * s * D, B * H)
    w2b = jnp.einsum("ho,ce->cheo", jnp.asarray(w2, jnp.float32), eye).reshape(B * H, B * DO)
    b1b = jnp.tile(jnp.asarray(b1, jnp.float32).reshape(1, H), (1, B))
    b2b = jnp.tile(jnp.asarray(b2, jnp.float32).reshape(1, DO), (1, B))
    return w1b.astype(compute_dtype), b1b, w2b.astype(compute_dtype), b2b


def _packed_forward(x, params, s, *, tokens_per_block, compute_dtype):
    F, v, D = x.shape
    hw = _image_side(v)
    B = hw // s
    R = F * B                          # packed rows; each row = B output tokens
    DO = params[2].shape[1]

    w1b, b1b, w2b, b2b = _packed_weights(params, s, D, B, compute_dtype)

    # CLS drop + cast (one fused XLA pass under jit); the reshape to packed rows is free.
    # TODO(synk): the CLS-drop slice is still one XLA pass over x; folding it into the
    # kernel would need per-frame element offsets (pl.Element) and tiny per-frame blocks.
    xr = x[:, 1:, :].astype(compute_dtype).reshape(R, s * hw * D)

    out = _run_mlp(xr, w1b, b1b, w2b, b2b, x.dtype,
                   row_tile=max(1, tokens_per_block // B))
    return out.reshape(F, B * B, DO)   # free row-major reshapes, no slice copy


# ---------------------------------------------------------------------------
# Fallback path (packed weights too large for VMEM): XLA pixel shuffle + plain MLP kernel.
# ---------------------------------------------------------------------------
def _pixel_shuffle(x, scale_factor=2):
    # mirrors MlpPixelShuffle.pixel_shuffle exactly (row-major view semantics)
    n, w, h, c = x.shape
    x = x.reshape(n, w, h // scale_factor, c * scale_factor)
    x = jnp.transpose(x, (0, 2, 1, 3))
    x = x.reshape(n, h // scale_factor, w // scale_factor, c * scale_factor * scale_factor)
    x = jnp.transpose(x, (0, 2, 1, 3))
    return x


def _fallback_forward(x, params, s, *, tokens_per_block, compute_dtype):
    F, v, D = x.shape
    hw = _image_side(v)
    B = hw // s
    w1, b1, w2, b2 = params
    K1, H = w1.shape
    DO = w2.shape[1]
    assert K1 == s * s * D, (K1, s, D)

    xs = x[:, 1:, :].astype(compute_dtype).reshape(F, hw, hw, D)
    x2d = _pixel_shuffle(xs, s).reshape(F * B * B, K1)

    # TODO(synk): if production K1/H/DO grow so even the plain weights exceed VMEM,
    # add hidden/output tiling grid axes instead of keeping full weights resident.
    out = _run_mlp(x2d,
                   jnp.asarray(w1, compute_dtype),
                   jnp.asarray(b1, jnp.float32).reshape(1, H),
                   jnp.asarray(w2, compute_dtype),
                   jnp.asarray(b2, jnp.float32).reshape(1, DO),
                   x.dtype, row_tile=tokens_per_block)
    return out.reshape(F, B * B, DO)


# ---------------------------------------------------------------------------
# Module-equivalent forward.
# ---------------------------------------------------------------------------
def mlp_pixel_shuffle_forward(x, params, scale_factor, *, tokens_per_block=2048,
                              compute_dtype=jnp.bfloat16,
                              max_packed_weight_bytes=8 << 20):
    """x: (F, v, D) with v = 1 + hw*hw.  Returns (F, (hw//s)^2, dim_out)."""
    F, v, D = x.shape
    hw = _image_side(v)
    s = int(scale_factor)
    assert s >= 1 and hw % s == 0, (hw, s)
    B = hw // s
    H = params[0].shape[1]
    DO = params[2].shape[1]
    packed_bytes = (s * hw * D * B * H + B * H * B * DO) * jnp.dtype(compute_dtype).itemsize
    if packed_bytes <= max_packed_weight_bytes:
        return _packed_forward(x, params, s, tokens_per_block=tokens_per_block,
                               compute_dtype=compute_dtype)
    return _fallback_forward(x, params, s, tokens_per_block=tokens_per_block,
                             compute_dtype=compute_dtype)


# ---------------------------------------------------------------------------
# Pure-JAX f32 reference for validation (mirrors the PyTorch module op-for-op).
# ---------------------------------------------------------------------------
def reference_forward(x, params, scale_factor):
    w1, b1, w2, b2 = params
    x = x[:, 1:, :]
    F = x.shape[0]
    hw = int(round(x.shape[1] ** 0.5))
    x = x.reshape(F, hw, hw, x.shape[-1])
    x = _pixel_shuffle(x, scale_factor)
    h = jnp.einsum("fijk,kh->fijh", x, w1) + jnp.reshape(b1, (-1,))
    h = _gelu_exact(h)
    o = jnp.einsum("fijh,ho->fijo", h, w2) + jnp.reshape(b2, (-1,))
    return o.reshape(F, -1, o.shape[-1])


# ---------------------------------------------------------------------------
if __name__ == "__main__":
    # Module config: dim_in=16, pixelshuffle_downsample_ratio=2, mlp_hidden_dim=None
    #   -> Linear(16*4=64 -> 32), GELU, Linear(32 -> 32)
    dim_in, scale, dim_out = 16, 2, 32
    K1 = dim_in * scale * scale      # 64
    hidden = dim_out                 # mlp_hidden_dim is None

    key = jax.random.PRNGKey(0)
    k1, k2, k3, k4, kx1, kx2 = jax.random.split(key, 6)
    w1 = jax.random.normal(k1, (K1, hidden), jnp.float32) * 0.05
    b1 = jax.random.normal(k2, (1, hidden), jnp.float32) * 0.01
    w2 = jax.random.normal(k3, (hidden, dim_out), jnp.float32) * 0.05
    b2 = jax.random.normal(k4, (1, dim_out), jnp.float32) * 0.01
    params = (w1, b1, w2, b2)

    def check(out, ref, shape, tag):
        assert out.shape == shape, (tag, out.shape, shape)
        err = float(jnp.max(jnp.abs(out - ref)))
        # bf16 MXU compute vs f32 reference -> ~1e-2-level drift is expected (inference-ok).
        assert jnp.allclose(out, ref, atol=2e-2, rtol=2e-2), (tag, err)

    # Config A: 16x16 spatial tokens (F=2) -> packed path, 2 parallel grid steps (megacore).
    F = 2
    xa = jax.random.normal(kx1, (F, 1 + 16 * 16, dim_in), jnp.float32)
    out_a = jax.block_until_ready(mlp_pixel_shuffle_forward(xa, params, scale))
    check(out_a, reference_forward(xa, params, scale),
          (F, (16 // scale) ** 2, dim_out), "A")

    # Config B: 24x24 spatial tokens (F=3) -> packed path with B=12 (not a multiple of 8)
    # and a row tile that does NOT divide the packed-row count (ragged last block).
    F = 3
    xb = jax.random.normal(kx2, (F, 1 + 24 * 24, dim_in), jnp.float32)
    out_b = jax.block_until_ready(
        mlp_pixel_shuffle_forward(xb, params, scale,
                                  tokens_per_block=16 * (24 // scale)))
    check(out_b, reference_forward(xb, params, scale),
          (F, (24 // scale) ** 2, dim_out), "B")

    # Config C: force the general fallback path (XLA pixel shuffle + plain MLP kernel)
    # with a token tile that does not divide the token count (ragged last block).
    out_c = jax.block_until_ready(
        mlp_pixel_shuffle_forward(xb, params, scale, tokens_per_block=320,
                                  max_packed_weight_bytes=0))
    check(out_c, reference_forward(xb, params, scale),
          (F, (24 // scale) ** 2, dim_out), "C")

    print("KERNEL_OK")
</pallas_src>

<mosaic_0001>
module attributes {stable_mosaic.version = 11 : i64} {
  func.func @_mlp_kernel(%arg0: i32, %arg1: memref<8x512xbf16, #tpu.memory_space<vmem>>, %arg2: memref<512x256xbf16, #tpu.memory_space<vmem>>, %arg3: memref<1x256xf32, #tpu.memory_space<vmem>>, %arg4: memref<256x256xbf16, #tpu.memory_space<vmem>>, %arg5: memref<1x256xf32, #tpu.memory_space<vmem>>, %arg6: memref<8x256xf32, #tpu.memory_space<vmem>>) attributes {dimension_semantics = [#tpu.dimension_semantics<parallel>], iteration_bounds = array<i64: 2>, scalar_prefetch = 0 : i64, scratch_operands = 0 : i64, tpu.core_type = #tpu.core_type<tc>, window_params = [{transform_indices = @transform_0, window_bounds = array<i64: 8, 512>}, {pipeline_mode = #tpu.pipeline_mode<synchronous>, transform_indices = @transform_1, window_bounds = array<i64: 512, 256>}, {pipeline_mode = #tpu.pipeline_mode<synchronous>, transform_indices = @transform_2, window_bounds = array<i64: 1, 256>}, {pipeline_mode = #tpu.pipeline_mode<synchronous>, transform_indices = @transform_3, window_bounds = array<i64: 256, 256>}, {pipeline_mode = #tpu.pipeline_mode<synchronous>, transform_indices = @transform_4, window_bounds = array<i64: 1, 256>}, {transform_indices = @transform_5, window_bounds = array<i64: 8, 256>}]} {
    %c0 = arith.constant 0 : index
    %c0_0 = arith.constant 0 : index
    %0 = vector.load %arg1[%c0, %c0_0] : memref<8x512xbf16, #tpu.memory_space<vmem>>, vector<8x512xbf16>
    %c0_1 = arith.constant 0 : index
    %c0_2 = arith.constant 0 : index
    %1 = vector.load %arg2[%c0_1, %c0_2] : memref<512x256xbf16, #tpu.memory_space<vmem>>, vector<512x256xbf16>
    %cst = arith.constant dense<0.000000e+00> : vector<8x256xf32>
    %2 = tpu.matmul %0, %1, %cst {dimension_numbers = #tpu.dot_dimension_numbers<[1], [0], [0], [1], [0, 0, 1, 1], [], []>} : vector<8x512xbf16>, vector<512x256xbf16>, vector<8x256xf32> -> vector<8x256xf32>
    %c0_3 = arith.constant 0 : index
    %c0_4 = arith.constant 0 : index
    %3 = vector.load %arg3[%c0_3, %c0_4] : memref<1x256xf32, #tpu.memory_space<vmem>>, vector<1x256xf32>
    %4 = vector.broadcast %3 : vector<1x256xf32> to vector<8x256xf32>
    %5 = arith.addf %2, %4 : vector<8x256xf32>
    %cst_5 = arith.constant 5.000000e-01 : f32
    %6 = vector.broadcast %cst_5 : f32 to vector<8x256xf32>
    %7 = arith.mulf %6, %5 : vector<8x256xf32>
    %cst_6 = arith.constant 0.707106769 : f32
    %8 = vector.broadcast %cst_6 : f32 to vector<8x256xf32>
    %9 = arith.mulf %5, %8 : vector<8x256xf32>
    %10 = math.erf %9 : vector<8x256xf32>
    %cst_7 = arith.constant 1.000000e+00 : f32
    %11 = vector.broadcast %cst_7 : f32 to vector<8x256xf32>
    %12 = arith.addf %11, %10 : vector<8x256xf32>
    %13 = arith.mulf %7, %12 : vector<8x256xf32>
    %14 = arith.truncf %13 : vector<8x256xf32> to vector<8x256xbf16>
    %c0_8 = arith.constant 0 : index
    %c0_9 = arith.constant 0 : index
    %15 = vector.load %arg4[%c0_8, %c0_9] : memref<256x256xbf16, #tpu.memory_space<vmem>>, vector<256x256xbf16>
    %cst_10 = arith.constant dense<0.000000e+00> : vector<8x256xf32>
    %16 = tpu.matmul %14, %15, %cst_10 {dimension_numbers = #tpu.dot_dimension_numbers<[1], [0], [0], [1], [0, 0, 1, 1], [], []>} : vector<8x256xbf16>, vector<256x256xbf16>, vector<8x256xf32> -> vector<8x256xf32>
    %c0_11 = arith.constant 0 : index
    %c0_12 = arith.constant 0 : index
    %17 = vector.load %arg5[%c0_11, %c0_12] : memref<1x256xf32, #tpu.memory_space<vmem>>, vector<1x256xf32>
    %18 = vector.broadcast %17 : vector<1x256xf32> to vector<8x256xf32>
    %19 = arith.addf %16, %18 : vector<8x256xf32>
    %c0_13 = arith.constant 0 : index
    %c0_14 = arith.constant 0 : index
    %20 = vector.load %arg6[%c0_13, %c0_14] : memref<8x256xf32, #tpu.memory_space<vmem>>, vector<8x256xf32>
    tpu.vector_store %arg6[%c0_13, %c0_14], %19 {strides = array<i32>} : memref<8x256xf32, #tpu.memory_space<vmem>>, vector<8x256xf32>,
    return
  }
  func.func @transform_0(%arg0: i32) -> (i32, i32) {
    %c0_i32 = arith.constant 0 : i32
    %c0_i32_0 = arith.constant 0 : i32
    return %arg0, %c0_i32 : i32, i32
  }
  func.func @transform_1(%arg0: i32) -> (i32, i32) {
    %c0_i32 = arith.constant 0 : i32
    %c0_i32_0 = arith.constant 0 : i32
    %c0_i32_1 = arith.constant 0 : i32
    return %c0_i32, %c0_i32_0 : i32, i32
  }
  func.func @transform_2(%arg0: i32) -> (i32, i32) {
    %c0_i32 = arith.constant 0 : i32
    %c0_i32_0 = arith.constant 0 : i32
    %c0_i32_1 = arith.constant 0 : i32
    return %c0_i32, %c0_i32_0 : i32, i32
  }
  func.func @transform_3(%arg0: i32) -> (i32, i32) {
    %c0_i32 = arith.constant 0 : i32
    %c0_i32_0 = arith.constant 0 : i32
    %c0_i32_1 = arith.constant 0 : i32
    return %c0_i32, %c0_i32_0 : i32, i32
  }
  func.func @transform_4(%arg0: i32) -> (i32, i32) {
    %c0_i32 = arith.constant 0 : i32
    %c0_i32_0 = arith.constant 0 : i32
    %c0_i32_1 = arith.constant 0 : i32
    return %c0_i32, %c0_i32_0 : i32, i32
  }
  func.func @transform_5(%arg0: i32) -> (i32, i32) {
    %c0_i32 = arith.constant 0 : i32
    %c0_i32_0 = arith.constant 0 : i32
    return %arg0, %c0_i32 : i32, i32
  }
}

</mosaic_0001>

<bundles_post_ra>
// kernel: tpu_custom_call.1
= control target key start
LH: loop header
LB: loop body
LE: loop exit
PB: predicated region body
PF: predicated region fallthrough
CT: control target
= control target key end

     0   :  { %10 = vsyncpa [#allocation3], 0  ;;  %s1923_s0 = inlined_call_operand.hbm [shape: bf16[16,512], index: 0, kind: input, shape index: {}]   ;;  %s1924_s1 = inlined_call_operand.hbm [shape: bf16[512,256], index: 1, kind: input, shape index: {}]   ;;  %s1925_s2 = inlined_call_operand.vmem [shape: f32[1,256], index: 2, kind: input, shape index: {}]   ;;  %s1926_s3 = inlined_call_operand.hbm [shape: bf16[256,256], index: 3, kind: input, shape index: {}]   ;;  %s1927_s4 = inlined_call_operand.vmem [shape: f32[1,256], index: 4, kind: input, shape index: {}]   ;;  %s1928_s5 = inlined_call_operand.hbm [shape: f32[16,256], index: 5, kind: output, shape index: {}]  }
   0x1   :  { %12 = vsyncpa [#allocation3 + $0x1], 0 }
   0x2   :  { %13 = vsyncpa [#allocation6], 0 }
   0x3   :  { %14 = vsyncpa [#allocation4], 0 }
   0x4   :  { %16 = vsyncpa [#allocation4 + $0x1], 0  ;;  %s1668_s18 = smov 0   ;;  %s1670_s19 = smov 0  }
   0x5   :  { %s1672_s20 = smov 0   ;;  %s1674_s21 = smov 0  }
   0x6 LB: > { %s1689_s22 = sadd.s32 4294967295, %s1630_s21   ;;  %s1127_s23 = sadd.s32 4294967294, %s1630_s21   ;;  %s1630_s21 = sphi %s1674_s21, %s1948_s21   ;;  %s1626_s20 = sphi %s1672_s20, %s1947_s20   ;;  %s1622_s19 = sphi %s1670_s19, %s1946_s19   ;;  %s1618_s18 = sphi %s1668_s18, %s1945_s18  }
   0x7   : > { %p42_p0 = scmp.ne.s32.totalorder %s1622_s19, %s1618_s18  ;;  %p1929_p1 = scmp.eq.s32.totalorder %s1689_s22, 0 }
   0x8   : > { %p156_p3 = scmp.eq.s32.totalorder %s1127_s23, 1  ;;  %p1128_p5 = scmp.ge.s32.totalorder %s1630_s21, 1 }
   0x9   : > { %p1698_p4 = por %p1929_p1, %p42_p0  ;;  %p163_p7 = scmp.lt.s32.totalorder %s1630_s21, 3 }
   0xa   : > { %p1703_p6 = por %p156_p3, %p42_p0  ;;  %s1632_s27 = smov [#allocation5]  }
   0xb   : > { %s1932_s24 = scalar_select %p1698_p4, 1, 0 }
   0xc   : > { %s1933_s25 = scalar_select %p1703_p6, 1, 0 }
   0xd   : > { %p1708_p8 = pnand %p1128_p5, %p163_p7  ;;  %s175_s28 = sshll.u32 %s1632_s27, 4  ;;  %s1712_s28 = int_to_ptr.vmem [resolvable:$true] %s175_s28 }
   0xe   : > { %s1633_s30 = smov [#allocation7]   ;;  %s1474_s9 = scalar_lea.hbm %s1924_s1, 8192 }
   0xf   : > { %p1265_p9 = pneg %p1708_p8  ;;  %s191_s6 = sshll.u32 %s1633_s30, 4  ;;  %s1723_s6 = int_to_ptr.vmem [resolvable:$true] %s191_s6 }
  0x10   : > { %p1475_p12 = scmp.ne.s32.totalorder %s1924_s1, %s1474_s9  ;;  %p1481_p5 = scmp.lt.u32.totalorder %s1474_s9, %s1924_s1 }
  0x11   : > { %p1719_p11 = pnand %p1265_p9, %p1929_p1 }
  0x13   : > { %p1476_p13 = pneg %p1719_p11 }
  0x15   : > { %p1477_p0 = pnand %p1476_p13, %p1475_p12 }
  0x17   : > { %p1478_p3 = pneg %p1477_p0 }
  0x19   : > { %p1483_p7 = pnand %p1481_p5, %p1478_p3 }
  0x1b   : > { %1486 = shalt.err (!%p1483_p7)
}
  0x1c   : > { %s1487_s14 = scalar_lea.vmem %s1712_s28, 8192  ;;  %p1495_p2 = scmp.lt.s32.totalorder %s1712_s28, %s1712_s28 }
  0x1d   : > { %p1488_p9 = scmp.ne.s32.totalorder %s1712_s28, %s1487_s14  ;;  %p1496_p12 = scmp.lt.s32.totalorder %s1487_s14, %s1487_s14 }
  0x1f   : > { %p1490_p10 = pnand %p1488_p9, %p1476_p13  ;;  %p1497_p0 = por %p1496_p12, %p1495_p2 }
  0x21   : > { %p1491_p1 = pneg %p1490_p10 }
  0x23   : > { %p1498_p6 = pnand %p1497_p0, %p1491_p1 }
  0x25   : > { %1501 = shalt.err (!%p1498_p6)
}
  0x26   : > { %s1634_s15 = smov 128   ;;  %s1635_s16 = smov 8  }
  0x27   : > { %1268 = dma.hbm_to_vmem [thread:$0]  (!%p1719_p11), %s1924_s1, 8192, %s1712_s28, [#allocation6], %s1634_s15, %s1634_s15, %s1635_s16  }
  0x28   : > { %s1502_s7 = scalar_lea.hbm %s1926_s3, 4096 }
  0x29   : > { %p1503_p2 = scmp.ne.s32.totalorder %s1926_s3, %s1502_s7  ;;  %p1509_p10 = scmp.lt.u32.totalorder %s1502_s7, %s1926_s3 }
  0x2b   : > { %p1505_p1 = pnand %p1503_p2, %p1476_p13 }
  0x2d   : > { %p1506_p6 = pneg %p1505_p1 }
  0x2f   : > { %p1511_p3 = pnand %p1509_p10, %p1506_p6 }
  0x31   : > { %1514 = shalt.err (!%p1511_p3)
}
  0x32   : > { %s1515_s28 = scalar_lea.vmem %s1723_s6, 4096  ;;  %p1523_p12 = scmp.lt.s32.totalorder %s1723_s6, %s1723_s6 }
  0x33   : > { %p1516_p5 = scmp.ne.s32.totalorder %s1723_s6, %s1515_s28  ;;  %p1524_p0 = scmp.lt.s32.totalorder %s1515_s28, %s1515_s28 }
  0x35   : > { %p1518_p7 = pnand %p1516_p5, %p1476_p13  ;;  %p1525_p2 = por %p1524_p0, %p1523_p12 }
  0x37   : > { %p1519_p9 = pneg %p1518_p7 }
  0x39   : > { %p1526_p1 = pnand %p1525_p2, %p1519_p9 }
  0x3b   : > { %1529 = shalt.err (!%p1526_p1)
}
  0x3c   : > { %1271 = dma.hbm_to_vmem [thread:$0]  (!%p1719_p11), %s1926_s3, 4096, %s1723_s6, [#allocation6], %s1634_s15, %s1634_s15, %s1635_s16  }
  0x3d   : > { %s1778_s14 = sadd.s32 1, %s1630_s21   ;;  %s29_s29 = sadd.s32 1, %s1626_s20 }
  0x3e   : > { %s26_s17 = ssub.s32 %s1630_s21, %s1778_s14  ;;  %p36_p13 = scmp.ne.s32.totalorder %s1626_s20, %s1622_s19 }
  0x3f   : > { %p27_p6 = scmp.eq.s32.totalorder %s26_s17, 0  ;;  %p37_p10 = scmp.eq.s32.totalorder %s1630_s21, 0 }
  0x40   : > { %p1936_p3 = scmp.eq.s32.totalorder %s1689_s22, 1  ;;  %p1282_p7 = scmp.lt.s32.totalorder %s1630_s21, 2 }
  0x41   : > { %s1794_s27 = scalar_select %p27_p6, %s1626_s20, %s29_s29  }
  0x42   : > { %p1788_p5 = por %p1936_p3, %p36_p13  ;;  %p38_p9 = por %p37_p10, %p36_p13 }
  0x43   : > { %s208_s30 = sand.u32 1, %s1626_s20   ;;  %s1245_s6 = sshll.u32 %s1630_s21, 8 }
  0x44   : > { %s1937_s23 = scalar_select %p1788_p5, 1, 0 }
  0x45   : > { %s1132_s7 = sshll.u32 %s208_s30, 4  ;;  %s1801_s8 = scalar_lea.hbm %s1923_s0, %s1245_s6 }
  0x46   : > { %s212_s9 = scalar_lea.vmem [#allocation2], %s1132_s7  ;;  %p1805_p11 = pnand %p1282_p7, %p38_p9 }
  0x47   : > { %s220_s10 = sshll.u32 %s212_s9, 4  ;;  %s209_s28 = scalar_lea.sflag [#allocation3], %s208_s30  ;;  %s1803_s10 = int_to_ptr.vmem [resolvable:$true] %s220_s10 }
  0x48   : > { %s1530_s12 = scalar_lea.hbm %s1801_s8, 256  ;;  %p1532_p0 = pneg %p1805_p11 }
  0x49   : > { %p1531_p12 = scmp.ne.s32.totalorder %s1801_s8, %s1530_s12  ;;  %s1535_s17 = scalar_lea.hbm %s1923_s0, 512 }
  0x4a   : > { %p1536_p13 = scmp.lt.u32.totalorder %s1801_s8, %s1923_s0  ;;  %p1537_p6 = scmp.lt.u32.totalorder %s1535_s17, %s1530_s12 }
  0x4b   : > { %p1533_p2 = pnand %p1532_p0, %p1531_p12  ;;  %p1539_p3 = scmp.lt.u32.totalorder %s1530_s12, %s1801_s8 }
  0x4c   : > { %p1538_p10 = por %p1537_p6, %p1536_p13 }
  0x4d   : > { %p1534_p1 = pneg %p1533_p2 }
  0x4e   : > { %p1540_p7 = por %p1539_p3, %p1538_p10 }
  0x50   : > { %p1541_p9 = pnand %p1540_p7, %p1534_p1 }
  0x52   : > { %1544 = shalt.err (!%p1541_p9)
}
  0x53   : > { %s1545_s30 = scalar_lea.vmem %s1803_s10, 256  ;;  %s1636_s15 = smov [#allocation2]  }
  0x54   : > { %p1546_p12 = scmp.ne.s32.totalorder %s1803_s10, %s1545_s30  ;;  %s1550_s16 = sshll.u32 %s1636_s15, 4  ;;  %s1551_s16 = int_to_ptr.vmem [resolvable:$false] %s1550_s16 }
  0x55   : > { %s1552_s9 = scalar_lea.vmem %s1551_s16, 512  ;;  %p1553_p4 = scmp.lt.s32.totalorder %s1803_s10, %s1551_s16 }
  0x56   : > { %p1548_p2 = pnand %p1546_p12, %p1532_p0  ;;  %p1554_p13 = scmp.lt.s32.totalorder %s1552_s9, %s1545_s30 }
  0x58   : > { %p1549_p5 = pneg %p1548_p2  ;;  %p1555_p6 = por %p1554_p13, %p1553_p4 }
  0x5a   : > { %p1556_p10 = pnand %p1555_p6, %p1549_p5 }
  0x5c   : > { %1559 = shalt.err (!%p1556_p10)
}
  0x5d   : > { %1275 = dma.hbm_to_vmem [thread:$0]  (!%p1805_p11), %s1801_s8, 256, %s1803_s10, %s209_s28  }
  0x5e   : > { %229 = sbr.rel (%p1708_p8) target bundleno = 698 (0x2ba), region = 40  ;;  %s1837_s12 = sand.u32 (!%p1708_p8), 1, %s1622_s19  }
  0x5f   : > { %s1136_s13 = sshll.u32 (!%p1708_p8), %s1837_s12, 4  ;;  %s232_s29 = scalar_lea.sflag (!%p1708_p8), [#allocation3], %s1837_s12 }
  0x60   : > { %s1843_s17 = scalar_lea.vmem (!%p1708_p8), [#allocation2], %s1136_s13  ;;  %p1939_p4 = scmp.ne.s32.totalorder (!%p1708_p8), %s1932_s24, 0 }
  0x65   : > { %1605 = dma.done.wait (%p1939_p4), %s232_s29, 256  }
  0x66   : > { %1607 = vsyncadd (%p1939_p4), %s232_s29, 4294967040  ;;  %p1940_p5 = scmp.eq.s32.totalorder %s1689_s22, 0 }
  0x68   : > { %1609 = dma.done.wait (%p1940_p5), [#allocation6], 12288   ;;  %p1941_p8 = pmov %p1940_p5 }
  0x69   : > { %v1322_v0 = vld [vmem:[#allocation5 + $0x4] ss:$8 sps:$4 sm:$0xff]   ;;  %v1324_v1 = vld [vmem:[#allocation5] ss:$8 sps:$4 sm:$0xff]   ;;  %v1325_v2 = vld [vmem:[#allocation5 + $0x14] ss:$8 sps:$4 sm:$0xff]  }
  0x6a   : > { %1611 = vsyncadd (%p1941_p8), [#allocation6], 4294955008  ;;  %682 = vmatprep.subr.bf16.mxu0 %v1322_v0  ;;  %v1327_v3 = vld [vmem:[#allocation5 + $0x10] ss:$8 sps:$4 sm:$0xff]   ;;  %v1328_v4 = vld [vmem:[#allocation5 + $0x24] ss:$8 sps:$4 sm:$0xff]  }
  0x6b   : > { %683 = vmatpush1.bf16.msra.mxu0 %v1324_v1  ;;  %v1330_v5 = vld [vmem:[#allocation5 + $0x20] ss:$8 sps:$4 sm:$0xff]   ;;  %v1331_v6 = vld [vmem:[#allocation5 + $0x34] ss:$8 sps:$4 sm:$0xff]   ;;  %v1333_v7 = vld [vmem:[#allocation5 + $0x30] ss:$8 sps:$4 sm:$0xff]  }
  0x6c   : > { %684 = vmatprep.subr.bf16.mxu0 %v1325_v2  ;;  %v1334_v8 = vld [vmem:[#allocation5 + $0x44] ss:$8 sps:$4 sm:$0xff]   ;;  %v1336_v9 = vld [vmem:[#allocation5 + $0x40] ss:$8 sps:$4 sm:$0xff]   ;;  %v1337_v10 = vld [vmem:[#allocation5 + $0x54] ss:$8 sps:$4 sm:$0xff]  }
  0x6d   : > { %v1339_v11 = vld [vmem:[#allocation5 + $0x50] ss:$8 sps:$4 sm:$0xff]   ;;  %v1340_v12 = vld [vmem:[#allocation5 + $0x64] ss:$8 sps:$4 sm:$0xff]   ;;  %v1342_v15 = vld [vmem:[#allocation5 + $0x60] ss:$8 sps:$4 sm:$0xff]  }
  0x6e   : > { %v1854_v13 = vld [vmem:[%s1843_s17] sm:$0xff]  ;;  %v1859_v45 = vld [vmem:[%s1843_s17 + $0x8] sm:$0xff]  ;;  %s1246_s11 = sshll.u32 %s1689_s22, 8  ;;  %s269_s28 = scalar_lea.vmem [#allocation8], %s1136_s13 }
  0x6f   : > { %685 = vmatpush1.bf16.msra.mxu0 %v1327_v3  ;;  %v1141_v14 = vcombine.high %v1854_v13, %v1854_v13  ;;  %v1343_v16 = vld [vmem:[#allocation5 + $0x74] ss:$8 sps:$4 sm:$0xff]   ;;  %v1345_v17 = vld [vmem:[#allocation5 + $0x70] ss:$8 sps:$4 sm:$0xff]   ;;  %v1346_v18 = vld [vmem:[#allocation5 + $0x84] ss:$8 sps:$4 sm:$0xff]   ;;  %v1140_v47 = vcombine.low %v1854_v13, %v1854_v13  ;;  %v1143_v49 = vcombine.high %v1859_v45, %v1859_v45  ;;  %s1879_s15 = scalar_lea.hbm %s1928_s5, %s1246_s11 }
  0x70   : > { %686 = vmatprep.subr.bf16.mxu0 %v1328_v4  ;;  %v1348_v19 = vld [vmem:[#allocation5 + $0x80] ss:$8 sps:$4 sm:$0xff]   ;;  %v1349_v20 = vld [vmem:[#allocation5 + $0x94] ss:$8 sps:$4 sm:$0xff]   ;;  %v1351_v21 = vld [vmem:[#allocation5 + $0x90] ss:$8 sps:$4 sm:$0xff]  }
  0x71   : > { %714 = vmatprep.mubr.bf16.mxu0 %v1141_v14  ;;  %v1352_v22 = vld [vmem:[#allocation5 + $0xa4] ss:$8 sps:$4 sm:$0xff]   ;;  %v1354_v23 = vld [vmem:[#allocation5 + $0xa0] ss:$8 sps:$4 sm:$0xff]   ;;  %v1355_v24 = vld [vmem:[#allocation5 + $0xb4] ss:$8 sps:$4 sm:$0xff]  }
  0x72   : > { %v1357_v25 = vld [vmem:[#allocation5 + $0xb0] ss:$8 sps:$4 sm:$0xff]   ;;  %v1358_v26 = vld [vmem:[#allocation5 + $0xc4] ss:$8 sps:$4 sm:$0xff]   ;;  %v1424_v28 = vld [vmem:[#allocation7] ss:$8 sps:$4 sm:$0xff]  }
  0x73   : > { %687 = vmatpush1.bf16.msra.mxu0 %v1330_v5  ;;  %v1422_v27 = vld [vmem:[#allocation7 + $0x4] ss:$8 sps:$4 sm:$0xff]   ;;  %v1425_v29 = vld [vmem:[#allocation7 + $0x14] ss:$8 sps:$4 sm:$0xff]   ;;  %v1360_v30 = vld [vmem:[#allocation5 + $0xc0] ss:$8 sps:$4 sm:$0xff]  }
  0x74   : > { %688 = vmatprep.subr.bf16.mxu0 %v1331_v6  ;;  %980 = vmatprep.subr.bf16.mxu1 %v1422_v27  ;;  %v1427_v31 = vld [vmem:[#allocation7 + $0x10] ss:$8 sps:$4 sm:$0xff]   ;;  %v1361_v32 = vld [vmem:[#allocation5 + $0xd4] ss:$8 sps:$4 sm:$0xff]   ;;  %v1428_v33 = vld [vmem:[#allocation7 + $0x24] ss:$8 sps:$4 sm:$0xff]  }
  0x75   : > { %981 = vmatpush1.bf16.msra.mxu1 %v1424_v28  ;;  %v1363_v34 = vld [vmem:[#allocation5 + $0xd0] ss:$8 sps:$4 sm:$0xff]   ;;  %v1430_v35 = vld [vmem:[#allocation7 + $0x20] ss:$8 sps:$4 sm:$0xff]   ;;  %v1364_v36 = vld [vmem:[#allocation5 + $0xe4] ss:$8 sps:$4 sm:$0xff]  }
  0x76   : > { %982 = vmatprep.subr.bf16.mxu1 %v1425_v29  ;;  %v1431_v37 = vld [vmem:[#allocation7 + $0x34] ss:$8 sps:$4 sm:$0xff]   ;;  %v1366_v38 = vld [vmem:[#allocation5 + $0xe0] ss:$8 sps:$4 sm:$0xff]   ;;  %v1433_v39 = vld [vmem:[#allocation7 + $0x30] ss:$8 sps:$4 sm:$0xff]  }
  0x77   : > { %689 = vmatpush1.bf16.msra.mxu0 %v1333_v7  ;;  %v1367_v40 = vld [vmem:[#allocation5 + $0xf4] ss:$8 sps:$4 sm:$0xff]   ;;  %v1434_v41 = vld [vmem:[#allocation7 + $0x44] ss:$8 sps:$4 sm:$0xff]   ;;  %v1369_v42 = vld [vmem:[#allocation5 + $0xf0] ss:$8 sps:$4 sm:$0xff]  }
  0x78   : > { %690 = vmatprep.subr.bf16.mxu0 %v1334_v8  ;;  %v1436_v43 = vld [vmem:[#allocation7 + $0x40] ss:$8 sps:$4 sm:$0xff]   ;;  %v1374_v44 = vld [vmem:[#allocation5 + $0x104] ss:$8 sps:$4 sm:$0xff]   ;;  %v1437_v46 = vld [vmem:[#allocation7 + $0x54] ss:$8 sps:$4 sm:$0xff]  }
  0x79   : > { %983 = vmatpush1.bf16.msra.mxu1 %v1427_v31  ;;  %v1372_v48 = vld [vmem:[#allocation5 + $0x100] ss:$8 sps:$4 sm:$0xff]   ;;  %v1377_v50 = vld [vmem:[#allocation5 + $0x114] ss:$8 sps:$4 sm:$0xff]   ;;  %v1439_v51 = vld [vmem:[#allocation7 + $0x50] ss:$8 sps:$4 sm:$0xff]  }
  0x7a   : > { %984 = vmatprep.subr.bf16.mxu1 %v1428_v33  ;;  %v1440_v52 = vld [vmem:[#allocation7 + $0x64] ss:$8 sps:$4 sm:$0xff]   ;;  %v1375_v53 = vld [vmem:[#allocation5 + $0x110] ss:$8 sps:$4 sm:$0xff]   ;;  %v1442_v55 = vld [vmem:[#allocation7 + $0x60] ss:$8 sps:$4 sm:$0xff]  }
  0x7b   : > { %691 = vmatpush1.bf16.msra.mxu0 %v1336_v9  ;;  %v1380_v54 = vld [vmem:[#allocation5 + $0x124] ss:$8 sps:$4 sm:$0xff]   ;;  %v1443_v56 = vld [vmem:[#allocation7 + $0x74] ss:$8 sps:$4 sm:$0xff]   ;;  %v1378_v57 = vld [vmem:[#allocation5 + $0x120] ss:$8 sps:$4 sm:$0xff]  }
  0x7c   : > { %692 = vmatprep.subr.bf16.mxu0 %v1337_v10  ;;  %v1383_v58 = vld [vmem:[#allocation5 + $0x134] ss:$8 sps:$4 sm:$0xff]   ;;  %v1445_v59 = vld [vmem:[#allocation7 + $0x70] ss:$8 sps:$4 sm:$0xff]   ;;  %v1446_v60 = vld [vmem:[#allocation7 + $0x84] ss:$8 sps:$4 sm:$0xff]  }
  0x7d   : > { %985 = vmatpush1.bf16.msra.mxu1 %v1430_v35  ;;  %v1381_v61 = vld [vmem:[#allocation5 + $0x130] ss:$8 sps:$4 sm:$0xff]   ;;  %v1386_v62 = vld [vmem:[#allocation5 + $0x144] ss:$8 sps:$4 sm:$0xff]   ;;  %v1448_v63 = vld [vmem:[#allocation7 + $0x80] ss:$8 sps:$4 sm:$0xff]  }
  0x7e   : > { %986 = vmatprep.subr.bf16.mxu1 %v1431_v37  ;;  %v1449_v0 = vld [vmem:[#allocation7 + $0x94] ss:$8 sps:$4 sm:$0xff]   ;;  %v1384_v1 = vld [vmem:[#allocation5 + $0x140] ss:$8 sps:$4 sm:$0xff]   ;;  %v1451_v3 = vld [vmem:[#allocation7 + $0x90] ss:$8 sps:$4 sm:$0xff]  }
  0x7f   : > { %693 = vmatpush1.bf16.msra.mxu0 %v1339_v11  ;;  %v1389_v2 = vld [vmem:[#allocation5 + $0x154] ss:$8 sps:$4 sm:$0xff]   ;;  %v1387_v4 = vld [vmem:[#allocation5 + $0x150] ss:$8 sps:$4 sm:$0xff]   ;;  %v1392_v5 = vld [vmem:[#allocation5 + $0x164] ss:$8 sps:$4 sm:$0xff]  }
  0x80   : > { %694 = vmatprep.subr.bf16.mxu0 %v1340_v12  ;;  %v1390_v6 = vld [vmem:[#allocation5 + $0x160] ss:$8 sps:$4 sm:$0xff]   ;;  %v1395_v7 = vld [vmem:[#allocation5 + $0x174] ss:$8 sps:$4 sm:$0xff]   ;;  %v1393_v8 = vld [vmem:[#allocation5 + $0x170] ss:$8 sps:$4 sm:$0xff]  }
  0x81   : > { %987 = vmatpush1.bf16.msra.mxu1 %v1433_v39  ;;  %v1398_v9 = vld [vmem:[#allocation5 + $0x184] ss:$8 sps:$4 sm:$0xff]   ;;  %v1396_v10 = vld [vmem:[#allocation5 + $0x180] ss:$8 sps:$4 sm:$0xff]   ;;  %v1401_v11 = vld [vmem:[#allocation5 + $0x194] ss:$8 sps:$4 sm:$0xff]  }
  0x82   : > { %988 = vmatprep.subr.bf16.mxu1 %v1434_v41  ;;  %v1399_v12 = vld [vmem:[#allocation5 + $0x190] ss:$8 sps:$4 sm:$0xff]   ;;  %v1404_v13 = vld [vmem:[#allocation5 + $0x1a4] ss:$8 sps:$4 sm:$0xff]   ;;  %v1402_v14 = vld [vmem:[#allocation5 + $0x1a0] ss:$8 sps:$4 sm:$0xff]  }
  0x83   : > { %695 = vmatpush1.bf16.msra.mxu0 %v1342_v15  ;;  %v1407_v15 = vld [vmem:[#allocation5 + $0x1b4] ss:$8 sps:$4 sm:$0xff]   ;;  %v1454_v27 = vld [vmem:[#allocation7 + $0xa0] ss:$8 sps:$4 sm:$0xff]   ;;  %v1457_v29 = vld [vmem:[#allocation7 + $0xb0] ss:$8 sps:$4 sm:$0xff]  }
  0x84   : > { %696 = vmatprep.subr.bf16.mxu0 %v1343_v16  ;;  %v1405_v16 = vld [vmem:[#allocation5 + $0x1b0] ss:$8 sps:$4 sm:$0xff]   ;;  %v1455_v28 = vld [vmem:[#allocation7 + $0xb4] ss:$8 sps:$4 sm:$0xff]   ;;  %v1460_v31 = vld [vmem:[#allocation7 + $0xc0] ss:$8 sps:$4 sm:$0xff]  }
  0x85   : > { %989 = vmatpush1.bf16.msra.mxu1 %v1436_v43  ;;  %v1463_v33 = vld [vmem:[#allocation7 + $0xd0] ss:$8 sps:$4 sm:$0xff]   ;;  %v1466_v35 = vld [vmem:[#allocation7 + $0xe0] ss:$8 sps:$4 sm:$0xff]   ;;  %s1038_s7 = sshll.u32 %s269_s28, 4  ;;  %s1024_s22 = scalar_lea.sflag [#allocation4], %s1837_s12  ;;  %s1881_s7 = int_to_ptr.vmem [resolvable:$true] %s1038_s7 }
  0x86   : > { %990 = vmatprep.subr.bf16.mxu1 %v1437_v46  ;;  %v1469_v37 = vld [vmem:[#allocation7 + $0xf0] ss:$8 sps:$4 sm:$0xff]   ;;  %v336_v41 = vld [vmem:[%s1925_s2] sm:$0x3]  ;;  %s1560_s16 = scalar_lea.vmem %s1881_s7, 256  ;;  %p1942_p0 = scmp.ne.s32.totalorder %s1937_s23, 0 }
  0x87   : > { %697 = vmatpush1.bf16.msra.mxu0 %v1345_v17  ;;  %v1410_v17 = vld [vmem:[#allocation5 + $0x1c4] ss:$8 sps:$4 sm:$0xff]   ;;  %p1561_p11 = scmp.ne.s32.totalorder %s1881_s7, %s1560_s16  ;;  %s1637_s9 = smov [#allocation8]  }
  0x88   : > { %698 = vmatprep.subr.bf16.mxu0 %v1346_v18  ;;  %v1408_v18 = vld [vmem:[#allocation5 + $0x1c0] ss:$8 sps:$4 sm:$0xff]   ;;  %s1564_s13 = sshll.u32 %s1637_s9, 4  ;;  %s1565_s13 = int_to_ptr.vmem [resolvable:$false] %s1564_s13 }
  0x89   : > { %991 = vmatpush1.bf16.msra.mxu1 %v1439_v51  ;;  %p1562_p1 = pnand %p1561_p11, %p1942_p0  ;;  %s1566_s29 = scalar_lea.vmem %s1565_s13, 512 }
  0x8a   : > { %992 = vmatprep.subr.bf16.mxu1 %v1440_v52  ;;  %p1567_p7 = scmp.lt.s32.totalorder %s1881_s7, %s1565_s13  ;;  %p1568_p9 = scmp.lt.s32.totalorder %s1566_s29, %s1560_s16 }
  0x8b   : > { %699 = vmatpush1.bf16.msra.mxu0 %v1348_v19  ;;  %v1413_v19 = vld [vmem:[#allocation5 + $0x1d4] ss:$8 sps:$4 sm:$0xff]   ;;  %p1563_p3 = pneg %p1562_p1 }
  0x8c   : > { %700 = vmatprep.subr.bf16.mxu0 %v1349_v20  ;;  %v1411_v20 = vld [vmem:[#allocation5 + $0x1d0] ss:$8 sps:$4 sm:$0xff]   ;;  %p1569_p12 = por %p1568_p9, %p1567_p7 }
  0x8d   : > { %993 = vmatpush1.bf16.msra.mxu1 %v1442_v55 }
  0x8e   : > { %994 = vmatprep.subr.bf16.mxu1 %v1443_v56  ;;  %p1570_p2 = pnand %p1569_p12, %p1563_p3 }
  0x8f   : > { %701 = vmatpush1.bf16.msra.mxu0 %v1351_v21  ;;  %v1416_v21 = vld [vmem:[#allocation5 + $0x1e4] ss:$8 sps:$4 sm:$0xff]  }
  0x90   : > { %702 = vmatprep.subr.bf16.mxu0 %v1352_v22  ;;  %v1414_v22 = vld [vmem:[#allocation5 + $0x1e0] ss:$8 sps:$4 sm:$0xff]  }
  0x91   : > { %995 = vmatpush1.bf16.msra.mxu1 %v1445_v59 }
  0x92   : > { %996 = vmatprep.subr.bf16.mxu1 %v1446_v60 }
  0x93   : > { %703 = vmatpush1.bf16.msra.mxu0 %v1354_v23  ;;  %v1419_v23 = vld [vmem:[#allocation5 + $0x1f4] ss:$8 sps:$4 sm:$0xff]  }
  0x94   : > { %704 = vmatprep.subr.bf16.mxu0 %v1355_v24  ;;  %v1417_v24 = vld [vmem:[#allocation5 + $0x1f0] ss:$8 sps:$4 sm:$0xff]  }
  0x95   : > { %997 = vmatpush1.bf16.msra.mxu1 %v1448_v63  ;;  %v808_v63 = vld [vmem:[%s1927_s4] sm:$0x3] }
  0x96   : > { %998 = vmatprep.subr.bf16.mxu1 %v1449_v0 }
  0x97   : > { %705 = vmatpush1.bf16.msra.mxu0 %v1357_v25  ;;  %v1142_v25 = vcombine.low %v1859_v45, %v1859_v45 }
  0x98   : > { %706 = vmatprep.subr.bf16.mxu0 %v1358_v26  ;;  %v1452_v26 = vld [vmem:[#allocation7 + $0xa4] ss:$8 sps:$4 sm:$0xff]  }
  0x99   : > { %999 = vmatpush1.bf16.msra.mxu1 %v1451_v3 }
  0x9a   : > { %1000 = vmatprep.subr.bf16.mxu1 %v1452_v26 }
  0x9b   : > { %707 = vmatpush1.bf16.msra.mxu0 %v1360_v30  ;;  %v1458_v30 = vld [vmem:[#allocation7 + $0xc4] ss:$8 sps:$4 sm:$0xff]  }
  0x9c   : > { %708 = vmatprep.subr.bf16.mxu0 %v1361_v32  ;;  %v1461_v32 = vld [vmem:[#allocation7 + $0xd4] ss:$8 sps:$4 sm:$0xff]  }
  0x9d   : > { %1001 = vmatpush1.bf16.msra.mxu1 %v1454_v27 }
  0x9e   : > { %1002 = vmatprep.subr.bf16.mxu1 %v1455_v28 }
  0x9f   : > { %709 = vmatpush1.bf16.msra.mxu0 %v1363_v34  ;;  %v1464_v34 = vld [vmem:[#allocation7 + $0xe4] ss:$8 sps:$4 sm:$0xff]  }
  0xa0   : > { %710 = vmatprep.subr.bf16.mxu0 %v1364_v36  ;;  %v1467_v36 = vld [vmem:[#allocation7 + $0xf4] ss:$8 sps:$4 sm:$0xff]  }
  0xa1   : > { %1003 = vmatpush1.bf16.msra.mxu1 %v1457_v29 }
  0xa2   : > { %1004 = vmatprep.subr.bf16.mxu1 %v1458_v30 }
  0xa3   : > { %711 = vmatpush1.bf16.msra.mxu0 %v1366_v38  ;;  %v338_v38 = vlaneseq }
  0xa4   : > { %712 = vmatprep.subr.bf16.mxu0 %v1367_v40 }
  0xa5   : > { %1005 = vmatpush1.bf16.msra.mxu1 %v1460_v31  ;;  %v339_v39 = vshrl.u32 %v338_v38, 7 }
  0xa6   : > { %1006 = vmatprep.subr.bf16.mxu1 %v1461_v32 }
  0xa7   : > { %713 = vmatpush1.bf16.msra.mxu0 %v1369_v42  ;;  %v340_v40 = vsub.s32 0, %v339_v39  ;;  %v344_v42 = vsub.s32 1, %v339_v39 }
  0xa8   : > { %723 = vmatprep.subr.bf16.mxu0 %v1374_v44 }
  0xa9   : > { %1007 = vmatpush1.bf16.msra.mxu1 %v1463_v33  ;;  %v341_v43 = vrot.slane %v336_v41, %v340_v40  ;;  %v345_v44 = vrot.slane %v336_v41, %v344_v42  ;;  %v813_v0 = vrot.slane %v808_v63, %v340_v40 }
  0xaa   : > { %715 = vmatmul.mubr.bf16.vlgmr.msra.gmra.mrb[0].mxu0 %v1140_v47  ;;  %1008 = vmatprep.subr.bf16.mxu1 %v1464_v34 }
  0xab   : > { %724 = vmatpush1.bf16.msra.mxu0 %v1372_v48  ;;  %755 = vmatprep.mubr.bf16.mxu0 %v1143_v49 }
  0xac   : > { %725 = vmatprep.subr.bf16.mxu0 %v1377_v50 }
  0xad   : > { %1009 = vmatpush1.bf16.msra.mxu1 %v1466_v35 }
  0xae   : > { %1010 = vmatprep.subr.bf16.mxu1 %v1467_v36 }
  0xaf   : > { %726 = vmatpush1.bf16.msra.mxu0 %v1375_v53 }
  0xb0   : > { %727 = vmatprep.subr.bf16.mxu0 %v1380_v54 }
  0xb1   : > { %1011 = vmatpush1.bf16.msra.mxu1 %v1469_v37 }
  0xb3   : > { %728 = vmatpush1.bf16.msra.mxu0 %v1378_v57 }
  0xb4   : > { %729 = vmatprep.subr.bf16.mxu0 %v1383_v58 }
  0xb7   : > { %730 = vmatpush1.bf16.msra.mxu0 %v1381_v61 }
  0xb8   : > { %731 = vmatprep.subr.bf16.mxu0 %v1386_v62 }
  0xbb   : > { %732 = vmatpush1.bf16.msra.mxu0 %v1384_v1  ;;  %v817_v1 = vrot.slane %v808_v63, %v344_v42 }
  0xbc   : > { %733 = vmatprep.subr.bf16.mxu0 %v1389_v2 }
  0xbf   : > { %734 = vmatpush1.bf16.msra.mxu0 %v1387_v4 }
  0xc0   : > { %735 = vmatprep.subr.bf16.mxu0 %v1392_v5 }
  0xc3   : > { %736 = vmatpush1.bf16.msra.mxu0 %v1390_v6 }
  0xc4   : > { %737 = vmatprep.subr.bf16.mxu0 %v1395_v7 }
  0xc7   : > { %738 = vmatpush1.bf16.msra.mxu0 %v1393_v8 }
  0xc8   : > { %739 = vmatprep.subr.bf16.mxu0 %v1398_v9 }
  0xcb   : > { %740 = vmatpush1.bf16.msra.mxu0 %v1396_v10 }
  0xcc   : > { %741 = vmatprep.subr.bf16.mxu0 %v1401_v11 }
  0xcf   : > { %742 = vmatpush1.bf16.msra.mxu0 %v1399_v12 }
  0xd0   : > { %743 = vmatprep.subr.bf16.mxu0 %v1404_v13 }
  0xd3   : > { %744 = vmatpush1.bf16.msra.mxu0 %v1402_v14 }
  0xd4   : > { %745 = vmatprep.subr.bf16.mxu0 %v1407_v15 }
  0xd7   : > { %746 = vmatpush1.bf16.msra.mxu0 %v1405_v16 }
  0xd8   : > { %747 = vmatprep.subr.bf16.mxu0 %v1410_v17 }
  0xdb   : > { %748 = vmatpush1.bf16.msra.mxu0 %v1408_v18 }
  0xdc   : > { %749 = vmatprep.subr.bf16.mxu0 %v1413_v19 }
  0xdf   : > { %750 = vmatpush1.bf16.msra.mxu0 %v1411_v20 }
  0xe0   : > { %751 = vmatprep.subr.bf16.mxu0 %v1416_v21 }
  0xe3   : > { %752 = vmatpush1.bf16.msra.mxu0 %v1414_v22 }
  0xe4   : > { %753 = vmatprep.subr.bf16.mxu0 %v1419_v23 }
  0xe7   : > { %754 = vmatpush1.bf16.msra.mxu0 %v1417_v24 }
  0xea   : > { %756 = vmatmul.mubr.bf16.vlgmr.msra.gmra.mrb[0].mxu0 %v1142_v25 }
 0x1bd   : > { %v757_v45 = vpop.f32.mrb[0].mxu0 }
 0x1be   : > { %v1247_v46 = vadd.f32 %v757_v45, %v341_v43  ;;  %v759_v47 = vpop.f32.mrb[1].mxu0 }
 0x1bf   : > { %v1248_v48 = vadd.f32 %v759_v47, %v345_v44  ;;  %v761_v49 = vpop.f32.mrb[2].mxu0 }
 0x1c0   : > { %v766_v50 = vmul.f32 0.70710677, %v1247_v46  ;;  %v762_v51 = vpop.f32.mrb[3].mxu0  ;;  %v764_v55 = vmul.f32 0.5, %v1247_v46 }
 0x1c1   : > { %v767_v52 = vmul.f32 0.70710677, %v1248_v48  ;;  %v765_v57 = vmul.f32 0.5, %v1248_v48 }
 0x1c2   : > { %1470 = verf.f32 %v766_v50 }
 0x1c3   : > { %1472 = verf.f32 %v767_v52 }
 0x1cc   : > { %v1471_v53 = vpop.eup %1470 }
 0x1cd   : > { %v1473_v54 = vpop.eup %1472  ;;  %v770_v56 = vadd.f32 1.0, %v1471_v53 }
 0x1ce   : > { %v771_v58 = vadd.f32 1.0, %v1473_v54 }
 0x1cf   : > { %v772_v59 = vmul.f32 %v770_v56, %v764_v55 }
 0x1d0   : > { %v773_v60 = vmul.f32 %v771_v58, %v765_v57 }
 0x1d1   : > { %v774_v62 = vpack.c.bf16 %v772_v59, %v772_v59 }
 0x1d2   : > { %v775_v61 = vpack.c.bf16 %v773_v60, %v773_v60 }
 0x1d4   : > { %1012 = vmatprep.mubr.bf16.mxu1 %v775_v61 }
 0x1d5   : > { %1013 = vmatmul.mubr.bf16.vlgmr.msra.gmra.mrb[0].mxu1 %v774_v62 }
 0x2a8   : > { %v1014_v2 = vpop.f32.mrb[0].mxu1 }
 0x2a9   : > { %v1015_v3 = vadd.f32 %v1014_v2, %v813_v0  ;;  %v1016_v4 = vpop.f32.mrb[1].mxu1 }
 0x2aa   : > { %v1017_v5 = vadd.f32 %v1016_v4, %v817_v1  ;;  %v1018_v6 = vpop.f32.mrb[2].mxu1 }
 0x2ab   : > { %1021 = vst [vmem:[%s269_s28] sm:$0xff] %v1015_v3  ;;  %v1019_v7 = vpop.f32.mrb[3].mxu1 }
 0x2ac   : > { %1022 = vst [vmem:[%s269_s28 + $0x8] sm:$0xff] %v1017_v5 }
 0x2ad   : > { %1573 = shalt.err (!%p1570_p2)
}
 0x2ae   : > { %s1574_s12 = scalar_lea.hbm %s1879_s15, 256  ;;  %s1578_s26 = scalar_lea.hbm %s1928_s5, 512 }
 0x2af   : > { %p1575_p13 = scmp.ne.s32.totalorder %s1879_s15, %s1574_s12  ;;  %p1579_p4 = scmp.lt.u32.totalorder %s1879_s15, %s1928_s5 }
 0x2b0   : > { %p1580_p5 = scmp.lt.u32.totalorder %s1578_s26, %s1574_s12  ;;  %p1582_p11 = scmp.lt.u32.totalorder %s1574_s12, %s1879_s15 }
 0x2b1   : > { %p1576_p6 = pnand %p1575_p13, %p1942_p0 }
 0x2b2   : > { %p1581_p8 = por %p1580_p5, %p1579_p4 }
 0x2b3   : > { %p1577_p10 = pneg %p1576_p6 }
 0x2b4   : > { %p1583_p1 = por %p1582_p11, %p1581_p8 }
 0x2b6   : > { %p1584_p3 = pnand %p1583_p1, %p1577_p10 }
 0x2b8   : > { %1587 = shalt.err (!%p1584_p3)
}
 0x2b9   : > { %1263 = dma.vmem_to_hbm [thread:$0]  (%p1942_p0), %s1881_s7, 256, %s1879_s15, %s1024_s22  }
 0x2ba PF: > { %s1050_s11 = sand.u32 1, %s1618_s18   ;;  %p1943_p7 = scmp.ne.s32.totalorder %s1933_s25, 0 }
 0x2bb   : > { %p1944_p9 = scmp.ge.s32.totalorder %s1630_s21, 2  ;;  %s1051_s28 = scalar_lea.sflag [#allocation4], %s1050_s11 }
 0x2bd   : > { %p1277_p12 = pnand %p1944_p9, %p1943_p7 }
 0x2bf   : > { %1613 = dma.done.wait (!%p1277_p12), %s1051_s28, 256  }
 0x2c0   : > { %1615 = vsyncadd (!%p1277_p12), %s1051_s28, 4294967040  ;;  %p19_p2 = scmp.ge.s32.totalorder %s1778_s14, 4   ;;  %s1945_s18 = smov %s1622_s19 }
 0x2c1   : > { %s1946_s19 = smov %s1626_s20  ;;  %s1947_s20 = smov %s1794_s27 }
 0x2c2   : > { %s1948_s21 = smov %s1778_s14  ;;  %21 = sbr.rel (!%p19_p2) target bundleno = 6 (0x6), region = 93 }
 0x2c9   :  { %1056 = vsyncpa [#allocation3], 1 }
 0x2ca   :  { %1058 = vsyncpa [#allocation3 + $0x1], 1 }
 0x2cb   :  { %1059 = vsyncpa [#allocation6], 1 }
 0x2cc   :  { %1060 = vsyncpa [#allocation4], 1 }
 0x2cd   :  { %1062 = vsyncpa [#allocation4 + $0x1], 1 }

</bundles_post_ra>
